<compile_context>
chip_gen: v6e
topology: v6e:2x2x1
jax: 0.10.0
libtpu: 0.0.40
codegen_flags: <defaults>
</compile_context>

<pallas_src>
import jax
import jax.numpy as jnp
from jax.experimental import pallas as pl
from jax.experimental.pallas import tpu as pltpu

_NEG_BIG = -1e30  # bias for padded vocab columns (exp() underflows to 0)


def _round_up(x, m):
    return (x + m - 1) // m * m


def _vmem_capacity_bytes():
    try:
        cap = int(pltpu.get_tpu_info().vmem_capacity_bytes)
        if cap > 0:
            return cap
    except Exception:
        pass
    return 64 * 1024 * 1024  # conservative (v7x per-TensorCore)


def _num_tensorcores():
    # TODO(synk): verify "parallel" shards the row axis across v7x's two
    # TensorCores; if not, switch that axis to pltpu.CORE_PARALLEL.
    try:
        kind = jax.devices()[0].device_kind.lower()
        if "v7" in kind or "7x" in kind:
            return 2
    except Exception:
        pass
    return 1


def _pick_tiles(rows, d_model, vocab):
    cap = _vmem_capacity_bytes()

    # K (d_model) tiling: whole padded d_model when possible (n_k == 1),
    # otherwise balanced ~2K-wide, 128-aligned tiles.
    dm_128 = _round_up(d_model, 128)
    if dm_128 <= 2048:
        tk = dm_128
    else:
        nk = pl.cdiv(dm_128, 2048)
        tk = _round_up(pl.cdiv(dm_128, nk), 128)
    dm_p = _round_up(dm_128, tk)

    # N (vocab) tiling: lane-dense, ~1024 wide, balanced to minimize padding.
    vocab_128 = _round_up(vocab, 128)
    if vocab_128 <= 1024:
        tn = vocab_128
    else:
        nj = pl.cdiv(vocab_128, 1024)
        tn = _round_up(pl.cdiv(vocab_128, nj), 128)
    vocab_p = _round_up(vocab_128, tn)

    # M (row) tiling: as large as the VMEM budget allows -- every doubling of
    # TM halves W re-streaming from HBM (arithmetic intensity ~TM flop/byte).
    # Resident per-row bytes: double-buffered f32 output block + double-
    # buffered bf16 x stripe + running stats.
    w_fixed = 2 * tk * tn * 2 + 2 * tn * 4          # dbl-buffered bf16 W + f32 bias
    budget = int(cap * 0.70) - w_fixed
    per_row = 2 * vocab_p * 4 + 2 * dm_p * 2 + 2 * 4
    tm_cap = max(8, (budget // per_row) // 8 * 8)
    tm = int(min(512, _round_up(rows, 8), tm_cap))

    # v7x megacore: if everything fits one row tile, split so both cores work.
    if _num_tensorcores() >= 2 and rows >= 16 and tm >= rows:
        tm = max(8, _round_up((rows + 1) // 2, 8))

    return tm, tn, tk, dm_p, vocab_p


def _generator_kernel(x_ref, w_ref, b_ref, o_ref, m_ref, l_ref):
    # x_ref: (TM, dm_p) bf16 (resident over j, k)   w_ref: (TK, TN) bf16
    # b_ref: (1, TN) f32                            o_ref: (TM, vocab_p) f32
    # m_ref / l_ref: (TM, 1) f32 running max / sum-exp
    j = pl.program_id(1)
    k = pl.program_id(2)
    n_j = pl.num_programs(1)
    n_k = pl.num_programs(2)
    tk = w_ref.shape[0]
    tn = w_ref.shape[1]

    # Reset running log-sum-exp stats at the start of every row tile.
    @pl.when((j == 0) & (k == 0))
    def _():
        m_ref[...] = jnp.full_like(m_ref, -jnp.inf)
        l_ref[...] = jnp.zeros_like(l_ref)

    # Current k-slice of the resident x stripe (static view when n_k == 1).
    if x_ref.shape[1] == tk:
        xk = x_ref[...]
    else:
        xk = x_ref[:, pl.ds(pl.multiple_of(k * tk, 128), tk)]

    # bf16 operands on the MXU, f32 accumulation.
    partial = jnp.dot(xk, w_ref[...], preferred_element_type=jnp.float32)

    # Lane-dense view of this vocab tile inside the resident output block
    # (static view when n_j == 1; 128-aligned dynamic lane slice otherwise).
    if o_ref.shape[1] == tn:
        out_tile = o_ref
    else:
        out_tile = o_ref.at[:, pl.ds(pl.multiple_of(j * tn, 128), tn)]

    # Bias folded into the first store; accumulate only when n_k > 1.
    @pl.when(k == 0)
    def _():
        out_tile[...] = b_ref[...] + partial

    @pl.when(k > 0)
    def _():
        out_tile[...] = out_tile[...] + partial

    # This vocab tile's logits are complete: fold into the running max/sum-exp.
    @pl.when(k == n_k - 1)
    def _():
        logits = out_tile[...]
        m_prev = m_ref[...]
        m_next = jnp.maximum(m_prev, jnp.max(logits, axis=-1, keepdims=True))
        l_ref[...] = (l_ref[...] * jnp.exp(m_prev - m_next)
                      + jnp.sum(jnp.exp(logits - m_next), axis=-1, keepdims=True))
        m_ref[...] = m_next

    # Last vocab tile of this row tile: normalize the whole resident block
    # in place with one vectorized pass (lane-dense stores).
    @pl.when((j == n_j - 1) & (k == n_k - 1))
    def _():
        lse = m_ref[...] + jnp.log(l_ref[...])          # (TM, 1)
        o_ref[...] = o_ref[...] - lse


@jax.jit
def generator_forward(x, w, b):
    """log_softmax(x @ w + b, axis=-1).

    x: (batch, seq, d_model) f32, w: (d_model, vocab) f32 (= Linear.weight.T),
    b: (vocab,) f32.  Returns (batch, seq, vocab) f32 log-probs.
    """
    batch, seq, d_model = x.shape
    vocab = w.shape[1]
    rows = batch * seq

    TM, TN, TK, dm_p, vocab_p = _pick_tiles(rows, d_model, vocab)
    rows_p = _round_up(rows, TM)
    n_i, n_j, n_k = rows_p // TM, vocab_p // TN, dm_p // TK

    # bf16 for the MXU / DMA streams; bias stays f32 (softmax path is f32).
    x2d = x.reshape(rows, d_model).astype(jnp.bfloat16)
    wp = w.astype(jnp.bfloat16)
    bp = b.astype(jnp.float32)
    if rows_p != rows or dm_p != d_model:
        x2d = jnp.pad(x2d, ((0, rows_p - rows), (0, dm_p - d_model)))
    if dm_p != d_model or vocab_p != vocab:
        wp = jnp.pad(wp, ((0, dm_p - d_model), (0, vocab_p - vocab)))
    if vocab_p != vocab:
        bp = jnp.pad(bp, ((0, vocab_p - vocab),), constant_values=_NEG_BIG)
    b2d = bp.reshape(1, vocab_p)

    cost = pl.CostEstimate(
        flops=2 * rows_p * dm_p * vocab_p,
        transcendentals=rows_p * vocab_p,
        bytes_accessed=(rows_p * dm_p * 2              # x: read once per row tile
                        + n_i * dm_p * vocab_p * 2     # W: re-streamed per row tile
                        + n_i * vocab_p * 4            # bias
                        + rows_p * vocab_p * 4),       # log-prob writeback
    )

    cap = _vmem_capacity_bytes()
    vmem_est = (2 * TM * vocab_p * 4       # double-buffered resident f32 output block
                + 2 * TM * dm_p * 2        # double-buffered resident bf16 x stripe
                + 2 * TK * TN * 2          # double-buffered bf16 W tile
                + 2 * TN * 4               # bias tiles
                + 2 * TM * 4)              # running stats scratch
    vmem_limit = int(min(cap, max(vmem_est * 5 // 4, 32 * 1024 * 1024)))

    out2d = pl.pallas_call(
        _generator_kernel,
        out_shape=jax.ShapeDtypeStruct((rows_p, vocab_p), jnp.float32),
        grid_spec=pltpu.PrefetchScalarGridSpec(
            num_scalar_prefetch=0,
            grid=(n_i, n_j, n_k),
            in_specs=[
                pl.BlockSpec((TM, dm_p), lambda i, j, k: (i, 0)),   # x stripe (resident over j, k)
                pl.BlockSpec((TK, TN), lambda i, j, k: (k, j)),     # W tile
                pl.BlockSpec((1, TN), lambda i, j, k: (0, j)),      # bias tile
            ],
            out_specs=pl.BlockSpec((TM, vocab_p), lambda i, j, k: (i, 0)),
            scratch_shapes=[
                pltpu.VMEM((TM, 1), jnp.float32),   # running max
                pltpu.VMEM((TM, 1), jnp.float32),   # running sum-exp
            ],
        ),
        compiler_params=pltpu.CompilerParams(
            dimension_semantics=("parallel", "arbitrary", "arbitrary"),
            vmem_limit_bytes=vmem_limit,
        ),
        cost_estimate=cost,
    )(x2d, wp, b2d)

    return out2d[:rows, :vocab].reshape(batch, seq, vocab)


def _reference(x, w, b):
    # Same bf16-rounded operands as the kernel, f32 accumulation + f32 softmax.
    xb = x.astype(jnp.bfloat16).astype(jnp.float32)
    wb = w.astype(jnp.bfloat16).astype(jnp.float32)
    logits = jnp.einsum("bsd,dv->bsv", xb, wb,
                        precision=jax.lax.Precision.HIGHEST) + b
    return jax.nn.log_softmax(logits, axis=-1)


if __name__ == "__main__":
    # Test 1: small shapes consistent with the module (single tile everywhere).
    batch, seq, d_model, vocab = 2, 8, 32, 128
    kx, kw, kb = jax.random.split(jax.random.PRNGKey(0), 3)
    x = jax.random.normal(kx, (batch, seq, d_model), dtype=jnp.float32)
    w = jax.random.normal(kw, (d_model, vocab), dtype=jnp.float32) * (1.0 / d_model ** 0.5)
    b = jax.random.normal(kb, (vocab,), dtype=jnp.float32) * 0.01

    out = generator_forward(x, w, b)
    jax.block_until_ready(out)
    ref = _reference(x, w, b)
    assert out.shape == (batch, seq, vocab)
    assert jnp.allclose(out, ref, atol=2e-3, rtol=2e-3), float(jnp.max(jnp.abs(out - ref)))

    # Test 2: exercises vocab tiling (n_j=3), d_model tiling (n_k=2), padding
    # and the online log-sum-exp across vocab tiles.
    batch2, seq2, d_model2, vocab2 = 2, 24, 2176, 2500
    k2x, k2w, k2b = jax.random.split(jax.random.PRNGKey(0), 3)
    x2 = jax.random.normal(k2x, (batch2, seq2, d_model2), dtype=jnp.float32)
    w2 = jax.random.normal(k2w, (d_model2, vocab2), dtype=jnp.float32) * (1.0 / d_model2 ** 0.5)
    b2 = jax.random.normal(k2b, (vocab2,), dtype=jnp.float32) * 0.01

    out2 = generator_forward(x2, w2, b2)
    jax.block_until_ready(out2)
    ref2 = _reference(x2, w2, b2)
    assert out2.shape == (batch2, seq2, vocab2)
    assert jnp.allclose(out2, ref2, atol=2e-3, rtol=2e-3), float(jnp.max(jnp.abs(out2 - ref2)))

    print("KERNEL_OK")
</pallas_src>

<mosaic_0001>
module attributes {stable_mosaic.version = 11 : i64} {
  func.func @_generator_kernel(%arg0: i32, %arg1: i32, %arg2: i32, %arg3: memref<16x128xbf16, #tpu.memory_space<vmem>>, %arg4: memref<128x128xbf16, #tpu.memory_space<vmem>>, %arg5: memref<1x128xf32, #tpu.memory_space<vmem>>, %arg6: memref<16x128xf32, #tpu.memory_space<vmem>>, %arg7: memref<16x1xf32, #tpu.memory_space<vmem>>, %arg8: memref<16x1xf32, #tpu.memory_space<vmem>>) attributes {dimension_semantics = [#tpu.dimension_semantics<parallel>, #tpu.dimension_semantics<arbitrary>, #tpu.dimension_semantics<arbitrary>], iteration_bounds = array<i64: 1, 1, 1>, scalar_prefetch = 0 : i64, scratch_operands = 2 : i64, tpu.core_type = #tpu.core_type<tc>, window_params = [{transform_indices = @transform_0, window_bounds = array<i64: 16, 128>}, {transform_indices = @transform_1, window_bounds = array<i64: 128, 128>}, {transform_indices = @transform_2, window_bounds = array<i64: 1, 128>}, {transform_indices = @transform_3, window_bounds = array<i64: 16, 128>}]} {
    %c0_i32 = arith.constant 0 : i32
    %0 = arith.cmpi eq, %arg1, %c0_i32 : i32
    %c0_i32_0 = arith.constant 0 : i32
    %1 = arith.cmpi eq, %arg2, %c0_i32_0 : i32
    %2 = arith.andi %0, %1 : i1
    %3 = arith.extui %2 : i1 to i32
    %c0_i32_1 = arith.constant 0 : i32
    %4 = arith.cmpi ne, %3, %c0_i32_1 : i32
    scf.if %4 {
      %cst_14 = arith.constant 0xFF800000 : f32
      %22 = vector.broadcast %cst_14 : f32 to vector<16x1xf32>
      %c0_15 = arith.constant 0 : index
      %c0_16 = arith.constant 0 : index
      %23 = vector.load %arg7[%c0_15, %c0_16] : memref<16x1xf32, #tpu.memory_space<vmem>>, vector<16x1xf32>
      tpu.vector_store %arg7[%c0_15, %c0_16], %22 {strides = array<i32>} : memref<16x1xf32, #tpu.memory_space<vmem>>, vector<16x1xf32>,
      %cst_17 = arith.constant 0.000000e+00 : f32
      %24 = vector.broadcast %cst_17 : f32 to vector<16x1xf32>
      %c0_18 = arith.constant 0 : index
      %c0_19 = arith.constant 0 : index
      %25 = vector.load %arg8[%c0_18, %c0_19] : memref<16x1xf32, #tpu.memory_space<vmem>>, vector<16x1xf32>
      tpu.vector_store %arg8[%c0_18, %c0_19], %24 {strides = array<i32>} : memref<16x1xf32, #tpu.memory_space<vmem>>, vector<16x1xf32>,
    } else {
    }
    %c0 = arith.constant 0 : index
    %c0_2 = arith.constant 0 : index
    %5 = vector.load %arg3[%c0, %c0_2] : memref<16x128xbf16, #tpu.memory_space<vmem>>, vector<16x128xbf16>
    %c0_3 = arith.constant 0 : index
    %c0_4 = arith.constant 0 : index
    %6 = vector.load %arg4[%c0_3, %c0_4] : memref<128x128xbf16, #tpu.memory_space<vmem>>, vector<128x128xbf16>
    %cst = arith.constant dense<0.000000e+00> : vector<16x128xf32>
    %7 = tpu.matmul %5, %6, %cst {dimension_numbers = #tpu.dot_dimension_numbers<[1], [0], [0], [1], [0, 0, 1, 1], [], []>} : vector<16x128xbf16>, vector<128x128xbf16>, vector<16x128xf32> -> vector<16x128xf32>
    %c0_i32_5 = arith.constant 0 : i32
    %8 = arith.cmpi eq, %arg2, %c0_i32_5 : i32
    %9 = arith.extui %8 : i1 to i32
    %c0_i32_6 = arith.constant 0 : i32
    %10 = arith.cmpi ne, %9, %c0_i32_6 : i32
    scf.if %10 {
      %c0_14 = arith.constant 0 : index
      %c0_15 = arith.constant 0 : index
      %22 = vector.load %arg5[%c0_14, %c0_15] : memref<1x128xf32, #tpu.memory_space<vmem>>, vector<1x128xf32>
      %23 = vector.broadcast %22 : vector<1x128xf32> to vector<16x128xf32>
      %24 = arith.addf %23, %7 : vector<16x128xf32>
      %c0_16 = arith.constant 0 : index
      %c0_17 = arith.constant 0 : index
      %25 = vector.load %arg6[%c0_16, %c0_17] : memref<16x128xf32, #tpu.memory_space<vmem>>, vector<16x128xf32>
      tpu.vector_store %arg6[%c0_16, %c0_17], %24 {strides = array<i32>} : memref<16x128xf32, #tpu.memory_space<vmem>>, vector<16x128xf32>,
    } else {
    }
    %c0_i32_7 = arith.constant 0 : i32
    %11 = arith.cmpi sgt, %arg2, %c0_i32_7 : i32
    %12 = arith.extui %11 : i1 to i32
    %c0_i32_8 = arith.constant 0 : i32
    %13 = arith.cmpi ne, %12, %c0_i32_8 : i32
    scf.if %13 {
      %c0_14 = arith.constant 0 : index
      %c0_15 = arith.constant 0 : index
      %22 = vector.load %arg6[%c0_14, %c0_15] : memref<16x128xf32, #tpu.memory_space<vmem>>, vector<16x128xf32>
      %23 = arith.addf %22, %7 : vector<16x128xf32>
      %c0_16 = arith.constant 0 : index
      %c0_17 = arith.constant 0 : index
      %24 = vector.load %arg6[%c0_16, %c0_17] : memref<16x128xf32, #tpu.memory_space<vmem>>, vector<16x128xf32>
      tpu.vector_store %arg6[%c0_16, %c0_17], %23 {strides = array<i32>} : memref<16x128xf32, #tpu.memory_space<vmem>>, vector<16x128xf32>,
    } else {
    }
    %c0_i32_9 = arith.constant 0 : i32
    %14 = arith.cmpi eq, %arg2, %c0_i32_9 : i32
    %15 = arith.extui %14 : i1 to i32
    %c0_i32_10 = arith.constant 0 : i32
    %16 = arith.cmpi ne, %15, %c0_i32_10 : i32
    scf.if %16 {
      %c0_14 = arith.constant 0 : index
      %c0_15 = arith.constant 0 : index
      %22 = vector.load %arg6[%c0_14, %c0_15] : memref<16x128xf32, #tpu.memory_space<vmem>>, vector<16x128xf32>
      %c0_16 = arith.constant 0 : index
      %c0_17 = arith.constant 0 : index
      %23 = vector.load %arg7[%c0_16, %c0_17] : memref<16x1xf32, #tpu.memory_space<vmem>>, vector<16x1xf32>
      %cst_18 = arith.constant dense<0xFF800000> : vector<16xf32>
      %24 = vector.multi_reduction <maximumf>, %22, %cst_18 [1] : vector<16x128xf32> to vector<16xf32>
      %25 = vector.shape_cast %24 : vector<16xf32> to vector<16x1xf32>
      %26 = arith.maximumf %23, %25 : vector<16x1xf32>
      %c0_19 = arith.constant 0 : index
      %c0_20 = arith.constant 0 : index
      %27 = vector.load %arg8[%c0_19, %c0_20] : memref<16x1xf32, #tpu.memory_space<vmem>>, vector<16x1xf32>
      %28 = arith.subf %23, %26 : vector<16x1xf32>
      %29 = math.exp %28 : vector<16x1xf32>
      %30 = arith.mulf %27, %29 : vector<16x1xf32>
      %31 = vector.broadcast %26 : vector<16x1xf32> to vector<16x128xf32>
      %32 = arith.subf %22, %31 : vector<16x128xf32>
      %33 = math.exp %32 : vector<16x128xf32>
      %cst_21 = arith.constant dense<0.000000e+00> : vector<16xf32>
      %34 = vector.multi_reduction <add>, %33, %cst_21 [1] : vector<16x128xf32> to vector<16xf32>
      %35 = vector.shape_cast %34 : vector<16xf32> to vector<16x1xf32>
      %36 = arith.addf %30, %35 : vector<16x1xf32>
      %c0_22 = arith.constant 0 : index
      %c0_23 = arith.constant 0 : index
      %37 = vector.load %arg8[%c0_22, %c0_23] : memref<16x1xf32, #tpu.memory_space<vmem>>, vector<16x1xf32>
      tpu.vector_store %arg8[%c0_22, %c0_23], %36 {strides = array<i32>} : memref<16x1xf32, #tpu.memory_space<vmem>>, vector<16x1xf32>,
      %c0_24 = arith.constant 0 : index
      %c0_25 = arith.constant 0 : index
      %38 = vector.load %arg7[%c0_24, %c0_25] : memref<16x1xf32, #tpu.memory_space<vmem>>, vector<16x1xf32>
      tpu.vector_store %arg7[%c0_24, %c0_25], %26 {strides = array<i32>} : memref<16x1xf32, #tpu.memory_space<vmem>>, vector<16x1xf32>,
    } else {
    }
    %c0_i32_11 = arith.constant 0 : i32
    %17 = arith.cmpi eq, %arg1, %c0_i32_11 : i32
    %c0_i32_12 = arith.constant 0 : i32
    %18 = arith.cmpi eq, %arg2, %c0_i32_12 : i32
    %19 = arith.andi %17, %18 : i1
    %20 = arith.extui %19 : i1 to i32
    %c0_i32_13 = arith.constant 0 : i32
    %21 = arith.cmpi ne, %20, %c0_i32_13 : i32
    scf.if %21 {
      %c0_14 = arith.constant 0 : index
      %c0_15 = arith.constant 0 : index
      %22 = vector.load %arg7[%c0_14, %c0_15] : memref<16x1xf32, #tpu.memory_space<vmem>>, vector<16x1xf32>
      %c0_16 = arith.constant 0 : index
      %c0_17 = arith.constant 0 : index
      %23 = vector.load %arg8[%c0_16, %c0_17] : memref<16x1xf32, #tpu.memory_space<vmem>>, vector<16x1xf32>
      %24 = math.log %23 : vector<16x1xf32>
      %25 = arith.addf %22, %24 : vector<16x1xf32>
      %c0_18 = arith.constant 0 : index
      %c0_19 = arith.constant 0 : index
      %26 = vector.load %arg6[%c0_18, %c0_19] : memref<16x128xf32, #tpu.memory_space<vmem>>, vector<16x128xf32>
      %27 = vector.broadcast %25 : vector<16x1xf32> to vector<16x128xf32>
      %28 = arith.subf %26, %27 : vector<16x128xf32>
      %c0_20 = arith.constant 0 : index
      %c0_21 = arith.constant 0 : index
      %29 = vector.load %arg6[%c0_20, %c0_21] : memref<16x128xf32, #tpu.memory_space<vmem>>, vector<16x128xf32>
      tpu.vector_store %arg6[%c0_20, %c0_21], %28 {strides = array<i32>} : memref<16x128xf32, #tpu.memory_space<vmem>>, vector<16x128xf32>,
    } else {
    }
    return
  }
  func.func @transform_0(%arg0: i32, %arg1: i32, %arg2: i32) -> (i32, i32) {
    %c0_i32 = arith.constant 0 : i32
    %c0_i32_0 = arith.constant 0 : i32
    return %arg0, %c0_i32 : i32, i32
  }
  func.func @transform_1(%arg0: i32, %arg1: i32, %arg2: i32) -> (i32, i32) {
    %c0_i32 = arith.constant 0 : i32
    return %arg2, %arg1 : i32, i32
  }
  func.func @transform_2(%arg0: i32, %arg1: i32, %arg2: i32) -> (i32, i32) {
    %c0_i32 = arith.constant 0 : i32
    %c0_i32_0 = arith.constant 0 : i32
    return %c0_i32, %arg1 : i32, i32
  }
  func.func @transform_3(%arg0: i32, %arg1: i32, %arg2: i32) -> (i32, i32) {
    %c0_i32 = arith.constant 0 : i32
    %c0_i32_0 = arith.constant 0 : i32
    return %arg0, %c0_i32 : i32, i32
  }
}

</mosaic_0001>

<bundles_post_ra>
// kernel: generator_forward.1
= control target key start
LH: loop header
LB: loop body
LE: loop exit
PB: predicated region body
PF: predicated region fallthrough
CT: control target
= control target key end

     0   :  { %v349_v1 = vmov 0.0   ;;  %vm350_vm0 = vmmov 0   ;;  %s427_s0 = inlined_call_operand.vmem [shape: bf16[16,128], index: 0, kind: input, shape index: {}]   ;;  %s428_s1 = inlined_call_operand.vmem [shape: bf16[128,128], index: 1, kind: input, shape index: {}]   ;;  %s429_s2 = inlined_call_operand.vmem [shape: f32[1,128], index: 2, kind: input, shape index: {}]   ;;  %s430_s3 = inlined_call_operand.hbm [shape: f32[16,128], index: 3, kind: output, shape index: {}]  }
   0x1   :  { %v306_v0 = vld [vmem:[%s428_s1 + $0x38] sm:$0xff]   ;;  %277 = vmatprep.subr.bf16.mxu0 %v349_v1  ;;  %v307_v2 = vld [vmem:[%s428_s1 + $0x30] sm:$0xff]   ;;  %293 = vmatprep.mubr.msk.bf16.mxu0 %vm350_vm0, %v349_v1  ;;  %v308_v3 = vld [vmem:[%s428_s1 + $0x28] sm:$0xff]  }
   0x2   :  { %278 = vmatpush3.bf16.msra.mxu0 %v306_v0 }
   0x3   :  { %279 = vmatprep.subr.bf16.mxu0 %v349_v1 }
   0x6   :  { %280 = vmatpush3.bf16.msra.mxu0 %v307_v2 }
   0x7   :  { %281 = vmatprep.subr.bf16.mxu0 %v349_v1 }
   0x8   :  { %8 = vsyncpa [#allocation5], 0  ;;  %v309_v4 = vld [vmem:[%s428_s1 + $0x20] sm:$0xff]   ;;  %v310_v5 = vld [vmem:[%s428_s1 + $0x18] sm:$0xff]   ;;  %vm22_vm1 = vcmask 7168   ;;  %v351_v16 = vmov -inf  }
   0x9   :  { %v311_v6 = vld [vmem:[%s428_s1 + $0x10] sm:$0xff]   ;;  %v312_v7 = vld [vmem:[%s428_s1 + $0x8] sm:$0xff]   ;;  %v313_v8 = vld [vmem:[%s428_s1] sm:$0xff]   ;;  %23 = vst.msk [vmem:[#allocation2] sm:$0xff] %vm22_vm1, %v351_v16  ;;  %v352_v18 = vmov 0  }
   0xa   :  { %282 = vmatpush3.bf16.msra.mxu0 %v308_v3  ;;  %v314_v9 = vld [vmem:[%s427_s0] sm:$0xff]   ;;  %24 = vst.msk [vmem:[#allocation2 + $0x8] sm:$0xff] %vm22_vm1, %v351_v16  ;;  %25 = vst.msk [vmem:[#allocation3] sm:$0xff] %vm22_vm1, %v349_v1  ;;  %304 = vset.pattern.permute.xlu1 %v352_v18  ;;  %s353_s0 = smov [#allocation4]  }
   0xb   :  { %283 = vmatprep.subr.bf16.mxu0 %v349_v1  ;;  %v267_v10 = vld [vmem:[%s429_s2] ss:$0 sm:$0xff]  ;;  %26 = vst.msk [vmem:[#allocation3 + $0x8] sm:$0xff] %vm22_vm1, %v349_v1  ;;  %305 = vset.pattern.permute.xlu0 %v352_v18  ;;  %s247_s1 = sshll.u32 %s353_s0, 4  ;;  %s248_s1 = int_to_ptr.vmem [resolvable:$true] %s247_s1 }
   0xc   :  { %s327_s2 = scalar_lea.vmem %s248_s1, 256  ;;  %p332_p1 = scmp.lt.s32.totalorder %s248_s1, %s248_s1 }
   0xd   :  { %p328_p0 = scmp.ne.s32.totalorder %s248_s1, %s327_s2  ;;  %p333_p2 = scmp.lt.s32.totalorder %s327_s2, %s327_s2 }
   0xe   :  { %284 = vmatpush3.bf16.msra.mxu0 %v309_v4 }
   0xf   :  { %285 = vmatprep.subr.bf16.mxu0 %v349_v1  ;;  %p334_p3 = por %p333_p2, %p332_p1 }
  0x10   :  { %v169_v19 = vld [vmem:[#allocation2] sm:$0xff] }
  0x11   :  { %v170_v22 = vld [vmem:[#allocation2 + $0x8] sm:$0xff]  ;;  %v177_v38 = vld [vmem:[#allocation3] sm:$0xff]  ;;  %p335_p4 = pnand %p334_p3, %p328_p0 }
  0x12   :  { %286 = vmatpush3.bf16.msra.mxu0 %v310_v5  ;;  %v178_v42 = vld [vmem:[#allocation3 + $0x8] sm:$0xff] }
  0x13   :  { %287 = vmatprep.subr.bf16.mxu0 %v349_v1 }
  0x16   :  { %288 = vmatpush3.bf16.msra.mxu0 %v311_v6 }
  0x17   :  { %289 = vmatprep.subr.bf16.mxu0 %v349_v1 }
  0x1a   :  { %290 = vmatpush3.bf16.msra.mxu0 %v312_v7 }
  0x1b   :  { %291 = vmatprep.subr.bf16.mxu0 %v349_v1 }
  0x1e   :  { %292 = vmatpush3.bf16.msra.mxu0 %v313_v8 }
  0x21   :  { %294 = vmatmul.mubr.bf16.vlgmr.msra.gmra.mxu0 %v314_v9 }
  0xe1   :  { %v133_v11 = vpop.f32.mrf.mxu0 }
  0xe2   :  { %v406_v12 = vadd.f32 %v267_v10, %v133_v11 }
  0xe3   :  { %v295_v13 = vpop.f32.mrf.mxu0 }
  0xe4   :  { %171 = vmax.xlane.f32.xlu0 %v406_v12 }
  0xe5   :  { %v136_v14 = vpop.f32.mrf.mxu0 }
  0xe6   :  { %v409_v15 = vadd.f32 %v267_v10, %v136_v14 }
  0xe7   :  { %v296_v17 = vpop.f32.mrf.mxu0 }
  0xe8   :  { %173 = vmax.xlane.f32.xlu0 %v409_v15 }
 0x16d   :  { %v172_v20 = vpop.xlane.xlu0 %171 }
 0x16e   :  { %v175_v21 = vmax.f32 %v169_v19, %v172_v20 }
 0x170   :  { %v179_v23 = vsub.f32 %v169_v19, %v175_v21  ;;  %212 = vst.msk [vmem:[#allocation2] sm:$0xff] %vm22_vm1, %v175_v21  ;;  %189 = vperm.xlu1 %304, %v175_v21  }
 0x171   :  { %v174_v24 = vpop.xlane.xlu0 %173 }
 0x172   :  { %v176_v25 = vmax.f32 %v170_v22, %v174_v24  ;;  %v181_v35 = vmul.f32 1.442695, %v179_v23 }
 0x174   :  { %v180_v26 = vsub.f32 %v170_v22, %v176_v25  ;;  %213 = vst.msk [vmem:[#allocation2 + $0x8] sm:$0xff] %vm22_vm1, %v176_v25  ;;  %194 = vperm.xlu1 %304, %v176_v25  }
 0x176   :  { %v183_v36 = vmul.f32 1.442695, %v180_v26 }
 0x177   :  { %v216_v51 = vld [vmem:[#allocation2] sm:$0xff] }
 0x17b   :  { %v217_v55 = vld [vmem:[#allocation2 + $0x8] sm:$0xff] }
 0x1eb   :  { %v190_v27 = vpop.permute.xlu1 %189 }
 0x1ec   :  { %v197_v28 = vsub.f32 %v406_v12, %v190_v27 }
 0x1ee   :  { %v199_v29 = vmul.f32 1.442695, %v197_v28 }
 0x1ef   :  { %v195_v30 = vpop.permute.xlu1 %194 }
 0x1f0   :  { %315 = vpow2.f32 %v199_v29  ;;  %v198_v31 = vsub.f32 %v409_v15, %v195_v30 }
 0x1f2   :  { %v201_v32 = vmul.f32 1.442695, %v198_v31 }
 0x1f4   :  { %317 = vpow2.f32 %v201_v32 }
 0x1f5   :  { %319 = vpow2.f32 %v181_v35 }
 0x1f6   :  { %321 = vpow2.f32 %v183_v36 }
 0x1fd   :  { %v316_v33 = vpop.eup %315 }
 0x1fe   :  { %203 = vadd.xlane.f32.xlu0 %v316_v33 }
 0x201   :  { %v318_v34 = vpop.eup %317 }
 0x202   :  { %205 = vadd.xlane.f32.xlu1 %v318_v34  ;;  %v320_v37 = vpop.eup %319 }
 0x203   :  { %v185_v39 = vmul.f32 %v320_v37, %v177_v38  ;;  %v322_v40 = vpop.eup %321 }
 0x204   :  { %v186_v44 = vmul.f32 %v322_v40, %v178_v42 }
 0x287   :  { %v204_v41 = vpop.xlane.xlu0 %203 }
 0x288   :  { %v207_v43 = vadd.f32 %v204_v41, %v185_v39 }
 0x28a   :  { %210 = vst.msk [vmem:[#allocation3] sm:$0xff] %vm22_vm1, %v207_v43 }
 0x28b   :  { %v206_v45 = vpop.xlane.xlu1 %205 }
 0x28c   :  { %v208_v46 = vadd.f32 %v206_v45, %v186_v44 }
 0x28e   :  { %211 = vst.msk [vmem:[#allocation3 + $0x8] sm:$0xff] %vm22_vm1, %v208_v46 }
 0x291   :  { %v218_v47 = vld [vmem:[#allocation3] sm:$0xff] }
 0x292   :  { %323 = vlog2.f32 %v218_v47 }
 0x295   :  { %v219_v48 = vld [vmem:[#allocation3 + $0x8] sm:$0xff] }
 0x296   :  { %325 = vlog2.f32 %v219_v48 }
 0x29f   :  { %v324_v49 = vpop.eup %323 }
 0x2a0   :  { %v221_v50 = vmul.f32 0.6931472, %v324_v49 }
 0x2a2   :  { %v224_v52 = vadd.f32 %v221_v50, %v216_v51 }
 0x2a3   :  { %v326_v53 = vpop.eup %325 }
 0x2a4   :  { %230 = vperm.xlu0 %305, %v224_v52   ;;  %v223_v54 = vmul.f32 0.6931472, %v326_v53 }
 0x2a6   :  { %v225_v56 = vadd.f32 %v223_v54, %v217_v55 }
 0x2a8   :  { %235 = vperm.xlu1 %304, %v225_v56  }
 0x31f   :  { %v231_v57 = vpop.permute.xlu0 %230 }
 0x320   :  { %v238_v58 = vsub.f32 %v406_v12, %v231_v57 }
 0x322   :  { %240 = vst [vmem:[#allocation4] sm:$0xff] %v238_v58 }
 0x323   :  { %v236_v59 = vpop.permute.xlu1 %235 }
 0x324   :  { %v239_v60 = vsub.f32 %v409_v15, %v236_v59 }
 0x326   :  { %241 = vst [vmem:[#allocation4 + $0x8] sm:$0xff] %v239_v60 }
 0x327   :  { %338 = shalt.err (!%p335_p4)
}
 0x328   :  { %s354_s5 = smov 128   ;;  %s355_s6 = smov 8  }
 0x329   :  { %253 = dma.vmem_to_hbm [thread:$0]  %s248_s1, 256, %s430_s3, [#allocation5], %s354_s5, %s354_s5, %s355_s6  }
 0x32a   :  { %347 = dma.done.wait [#allocation5], 256  }
 0x32b   :  { %348 = vsyncadd [#allocation5], 4294967040 }
 0x32c   :  { %257 = vsyncpa [#allocation5], 1 }

</bundles_post_ra>
